<compile_context>
chip_gen: v5e
topology: v5e:2x2
jax: 0.10.0
libtpu: 0.0.40
codegen_flags: <defaults>
</compile_context>

<pallas_src>
import functools

import jax
import jax.numpy as jnp
from jax.experimental import pallas as pl
from jax.experimental.pallas import tpu as pltpu


def _make_dice_partials_kernel(r_total, tile_r):
    """Kernel emitting per-(n,r)-block lane-wise partial sums into out[r,:,n,:]."""
    needs_mask = (r_total % tile_r) != 0
    r_last_valid = r_total % tile_r  # valid rows in the ragged last R-block

    def kernel(in_ref, tgt_ref, out_ref):
        x = in_ref[...].astype(jnp.float32)   # (tile_n, tile_r, 128)
        t = tgt_ref[...].astype(jnp.float32)

        def emit(xv, tv):
            # Cheap VPU adds + one sublane reduce per output row; the
            # cross-lane reduction happens once, outside the kernel.
            out_ref[0, 0, :, :] = jnp.sum(xv * tv, axis=1)   # intersection
            out_ref[0, 1, :, :] = jnp.sum(xv, axis=1)        # input sum
            out_ref[0, 2, :, :] = jnp.sum(tv, axis=1)        # target sum

        if not needs_mask:
            emit(x, t)
        else:
            r = pl.program_id(1)
            nr = pl.num_programs(1)

            @pl.when(r != nr - 1)
            def _():
                emit(x, t)

            @pl.when(r == nr - 1)
            def _():
                # Only the last R-block pays the mask; rows past the end of
                # the feature dim are undefined and must be zeroed before the
                # sum.  A (1, tile_r, 1) iota broadcasts across N and lanes.
                row = jax.lax.broadcasted_iota(jnp.int32, (1, tile_r, 1), 1)
                valid = row < r_last_valid
                emit(jnp.where(valid, x, 0.0), jnp.where(valid, t, 0.0))

    return kernel


@functools.partial(jax.jit, static_argnames=("target_block_bytes",))
def dice_loss(inp, target, *, target_block_bytes=4 << 20):
    """Exact equivalent of DiceLoss.forward (smooth = 1)."""
    assert inp.shape == target.shape
    N = inp.shape[0]
    x = inp.reshape(N, -1)
    t = target.reshape(N, -1)
    D = x.shape[1]
    smooth = jnp.float32(1.0)

    d_main = (D // 128) * 128   # lane-aligned bulk, handled by the kernel
    R = d_main // 128

    inter = jnp.zeros((N,), jnp.float32)
    x_sum = jnp.zeros((N,), jnp.float32)
    t_sum = jnp.zeros((N,), jnp.float32)

    if R > 0:
        if d_main == D:
            xm = x.reshape(N, R, 128)          # free, reshape-only path
            tm = t.reshape(N, R, 128)
        else:
            xm = x[:, :d_main].reshape(N, R, 128)
            tm = t[:, :d_main].reshape(N, R, 128)

        isz_x = jnp.dtype(xm.dtype).itemsize
        isz_t = jnp.dtype(tm.dtype).itemsize
        # Dtype-aware sublane packing for the block's second-to-last dim.
        sub = {4: 8, 2: 16, 1: 32}
        sublane_r = max(sub.get(isz_x, 8), sub.get(isz_t, 8))

        # Batch tiling: decouple block bytes from N; tile_n <= 64 keeps tile_r
        # large so the per-block partials output stays ~1-2% of input bytes.
        n_cap = 64                              # multiple of 32 -> all dtypes OK
        if N <= n_cap:
            tile_n, grid_n = N, 1
        else:
            tile_n = n_cap
            grid_n = pl.cdiv(N, tile_n)         # ragged last N-block: OOB rows
                                                # never touch valid output rows

        # Per-generation scoped-VMEM budget (v7x: 64 MiB physical, v5e/v6e: 128).
        try:
            vmem_cap = int(pltpu.get_tpu_info().vmem_capacity_bytes)
            if vmem_cap <= 0:
                vmem_cap = 64 * 1024 * 1024
        except Exception:
            vmem_cap = 64 * 1024 * 1024
        vmem_limit = min(vmem_cap // 2, 96 * 1024 * 1024)
        # 2 inputs x 2 pipeline buffers must fit with headroom for partials.
        block_budget = max(1, min(target_block_bytes, (vmem_limit * 7 // 10) // 4))

        bytes_per_r = tile_n * 128 * max(isz_x, isz_t)
        r_ceil = sublane_r * pl.cdiv(R, sublane_r)
        tile_r = (block_budget // bytes_per_r) // sublane_r * sublane_r
        tile_r = max(sublane_r, min(tile_r, r_ceil))
        if grid_n == 1 and r_ceil >= 8 * sublane_r:
            # Keep >= ~8 grid steps so the "parallel" axis load-balances
            # across both TensorCores on v7x.
            tile_r = min(tile_r,
                         max(sublane_r, (r_ceil // 8) // sublane_r * sublane_r))
        grid_r = pl.cdiv(R, tile_r)

        kernel = _make_dice_partials_kernel(R, tile_r)

        cost = pl.CostEstimate(
            flops=3 * N * d_main,
            transcendentals=0,
            bytes_accessed=N * d_main * (isz_x + isz_t)
            + grid_r * 3 * N * 128 * 4,
        )

        parts = pl.pallas_call(
            kernel,
            out_shape=jax.ShapeDtypeStruct((grid_r, 3, N, 128), jnp.float32),
            grid_spec=pltpu.PrefetchScalarGridSpec(
                num_scalar_prefetch=0,
                grid=(grid_n, grid_r),
                in_specs=[
                    pl.BlockSpec((tile_n, tile_r, 128), lambda n, r: (n, r, 0)),
                    pl.BlockSpec((tile_n, tile_r, 128), lambda n, r: (n, r, 0)),
                ],
                out_specs=pl.BlockSpec((1, 3, tile_n, 128),
                                       lambda n, r: (r, 0, n, 0)),
            ),
            compiler_params=pltpu.CompilerParams(
                # Independent partial sums per block -> both TCs usable on v7x.
                dimension_semantics=("parallel", "parallel"),
                vmem_limit_bytes=vmem_limit,
            ),
            cost_estimate=cost,
        )(xm, tm)

        sums = parts.sum(axis=(0, 3))            # (3, N) f32, tiny combine
        inter = inter + sums[0]
        x_sum = x_sum + sums[1]
        t_sum = t_sum + sums[2]

    if d_main != D:
        # <128-column tail folded into the plain-JAX combine; avoids a
        # full-array pad/copy in HBM for unaligned feature dims.
        xt = x[:, d_main:].astype(jnp.float32)
        tt = t[:, d_main:].astype(jnp.float32)
        inter = inter + (xt * tt).sum(1)
        x_sum = x_sum + xt.sum(1)
        t_sum = t_sum + tt.sum(1)

    dice = 2.0 * (inter + smooth) / (x_sum + t_sum + smooth)
    return jnp.float32(1.0) - jnp.sum(dice) / jnp.float32(N)


def _dice_loss_ref(inp, target):
    N = target.shape[0]
    smooth = 1.0
    x = inp.reshape(N, -1).astype(jnp.float32)
    t = target.reshape(N, -1).astype(jnp.float32)
    inter = (x * t).sum(1)
    loss = 2.0 * (inter + smooth) / (x.sum(1) + t.sum(1) + smooth)
    return 1.0 - loss.sum() / N


if __name__ == "__main__":
    key = jax.random.PRNGKey(0)
    k1, k2 = jax.random.split(key)
    # (N, C, H, W) like the PyTorch NCHW inputs; the wrapper flattens to (N, D).
    x = jax.random.uniform(k1, (2, 4, 16, 16), dtype=jnp.float32)
    y = (jax.random.uniform(k2, (2, 4, 16, 16)) > 0.5).astype(jnp.float32)

    loss = jax.block_until_ready(dice_loss(x, y))
    ref = _dice_loss_ref(x, y)
    assert jnp.allclose(loss, ref, rtol=1e-5, atol=1e-5), (loss, ref)
    print("KERNEL_OK")
</pallas_src>

<mosaic_0001>
module attributes {stable_mosaic.version = 11 : i64} {
  func.func @kernel(%arg0: i32, %arg1: i32, %arg2: memref<2x8x128xf32, #tpu.memory_space<vmem>>, %arg3: memref<2x8x128xf32, #tpu.memory_space<vmem>>, %arg4: memref<1x3x2x128xf32, #tpu.memory_space<vmem>>) attributes {dimension_semantics = [#tpu.dimension_semantics<parallel>, #tpu.dimension_semantics<parallel>], iteration_bounds = array<i64: 1, 1>, scalar_prefetch = 0 : i64, scratch_operands = 0 : i64, tpu.core_type = #tpu.core_type<tc>, window_params = [{transform_indices = @transform_0, window_bounds = array<i64: 2, 8, 128>}, {transform_indices = @transform_1, window_bounds = array<i64: 2, 8, 128>}, {transform_indices = @transform_2, window_bounds = array<i64: 1, 3, 2, 128>}]} {
    %c0 = arith.constant 0 : index
    %c0_0 = arith.constant 0 : index
    %c0_1 = arith.constant 0 : index
    %0 = vector.load %arg2[%c0, %c0_0, %c0_1] : memref<2x8x128xf32, #tpu.memory_space<vmem>>, vector<2x8x128xf32>
    %c0_2 = arith.constant 0 : index
    %c0_3 = arith.constant 0 : index
    %c0_4 = arith.constant 0 : index
    %1 = vector.load %arg3[%c0_2, %c0_3, %c0_4] : memref<2x8x128xf32, #tpu.memory_space<vmem>>, vector<2x8x128xf32>
    %2 = arith.mulf %0, %1 : vector<2x8x128xf32>
    %cst = arith.constant dense<0.000000e+00> : vector<2x128xf32>
    %3 = vector.multi_reduction <add>, %2, %cst [1] : vector<2x8x128xf32> to vector<2x128xf32>
    %c0_5 = arith.constant 0 : index
    %c0_6 = arith.constant 0 : index
    %c0_7 = arith.constant 0 : index
    %c0_8 = arith.constant 0 : index
    %4 = vector.load %arg4[%c0_5, %c0_6, %c0_7, %c0_8] : memref<1x3x2x128xf32, #tpu.memory_space<vmem>>, vector<1x1x2x128xf32>
    %5 = vector.shape_cast %4 : vector<1x1x2x128xf32> to vector<2x128xf32>
    %6 = vector.shape_cast %3 : vector<2x128xf32> to vector<1x1x2x128xf32>
    tpu.vector_store %arg4[%c0_5, %c0_6, %c0_7, %c0_8], %6 {strides = array<i32>} : memref<1x3x2x128xf32, #tpu.memory_space<vmem>>, vector<1x1x2x128xf32>,
    %cst_9 = arith.constant dense<0.000000e+00> : vector<2x128xf32>
    %7 = vector.multi_reduction <add>, %0, %cst_9 [1] : vector<2x8x128xf32> to vector<2x128xf32>
    %c0_10 = arith.constant 0 : index
    %c1 = arith.constant 1 : index
    %c0_11 = arith.constant 0 : index
    %c0_12 = arith.constant 0 : index
    %8 = vector.load %arg4[%c0_10, %c1, %c0_11, %c0_12] : memref<1x3x2x128xf32, #tpu.memory_space<vmem>>, vector<1x1x2x128xf32>
    %9 = vector.shape_cast %8 : vector<1x1x2x128xf32> to vector<2x128xf32>
    %10 = vector.shape_cast %7 : vector<2x128xf32> to vector<1x1x2x128xf32>
    tpu.vector_store %arg4[%c0_10, %c1, %c0_11, %c0_12], %10 {strides = array<i32>} : memref<1x3x2x128xf32, #tpu.memory_space<vmem>>, vector<1x1x2x128xf32>,
    %cst_13 = arith.constant dense<0.000000e+00> : vector<2x128xf32>
    %11 = vector.multi_reduction <add>, %1, %cst_13 [1] : vector<2x8x128xf32> to vector<2x128xf32>
    %c0_14 = arith.constant 0 : index
    %c2 = arith.constant 2 : index
    %c0_15 = arith.constant 0 : index
    %c0_16 = arith.constant 0 : index
    %12 = vector.load %arg4[%c0_14, %c2, %c0_15, %c0_16] : memref<1x3x2x128xf32, #tpu.memory_space<vmem>>, vector<1x1x2x128xf32>
    %13 = vector.shape_cast %12 : vector<1x1x2x128xf32> to vector<2x128xf32>
    %14 = vector.shape_cast %11 : vector<2x128xf32> to vector<1x1x2x128xf32>
    tpu.vector_store %arg4[%c0_14, %c2, %c0_15, %c0_16], %14 {strides = array<i32>} : memref<1x3x2x128xf32, #tpu.memory_space<vmem>>, vector<1x1x2x128xf32>,
    return
  }
  func.func @transform_0(%arg0: i32, %arg1: i32) -> (i32, i32, i32) {
    %c0_i32 = arith.constant 0 : i32
    %c0_i32_0 = arith.constant 0 : i32
    return %arg0, %arg1, %c0_i32 : i32, i32, i32
  }
  func.func @transform_1(%arg0: i32, %arg1: i32) -> (i32, i32, i32) {
    %c0_i32 = arith.constant 0 : i32
    %c0_i32_0 = arith.constant 0 : i32
    return %arg0, %arg1, %c0_i32 : i32, i32, i32
  }
  func.func @transform_2(%arg0: i32, %arg1: i32) -> (i32, i32, i32, i32) {
    %c0_i32 = arith.constant 0 : i32
    %c0_i32_0 = arith.constant 0 : i32
    %c0_i32_1 = arith.constant 0 : i32
    return %arg1, %c0_i32, %arg0, %c0_i32_0 : i32, i32, i32, i32
  }
}

</mosaic_0001>

<bundles_post_ra>
// kernel: dice_loss.1
= control target key start
LH: loop header
LB: loop body
LE: loop exit
PB: predicated region body
PF: predicated region fallthrough
CT: control target
= control target key end

     0   :  { %vm31_vm0 = vcmask 1041409   ;;  %s113_s0 = inlined_call_operand.vmem [shape: f32[2,8,128], index: 0, kind: input, shape index: {}]   ;;  %s114_s1 = inlined_call_operand.vmem [shape: f32[2,8,128], index: 1, kind: input, shape index: {}]   ;;  %s115_s2 = inlined_call_operand.vmem [shape: f32[1,3,2,128], index: 2, kind: output, shape index: {}]  }
   0x1   :  { %v11_v0 = vld [vmem:[%s113_s0] sm:$0xff]  ;;  %v12_v1 = vld [vmem:[%s113_s0 + $0x8] sm:$0xff] }
   0x2   :  { %v13_v2 = vld [vmem:[%s114_s1] sm:$0xff]  ;;  %v14_v3 = vld [vmem:[%s114_s1 + $0x8] sm:$0xff]  ;;  %v35_v5 = vrot.slane %v11_v0, 4  ;;  %v41_v6 = vrot.slane %v12_v1, 4 }
   0x3   :  { %v15_v4 = vmul.f32 %v13_v2, %v11_v0  ;;  %v53_v7 = vrot.slane %v13_v2, 4  ;;  %v16_v8 = vmul.f32 %v14_v3, %v12_v1  ;;  %v59_v9 = vrot.slane %v14_v3, 4 }
   0x4   :  { %v36_v11 = vadd.f32 %v35_v5, %v11_v0  ;;  %v42_v12 = vadd.f32 %v41_v6, %v12_v1 }
   0x5   :  { %v17_v10 = vrot.slane %v15_v4, 4  ;;  %v54_v13 = vadd.f32 %v53_v7, %v13_v2  ;;  %v23_v14 = vrot.slane %v16_v8, 4  ;;  %v60_v15 = vadd.f32 %v59_v9, %v14_v3 }
   0x6   :  { %v37_v17 = vrot.slane %v36_v11, 2  ;;  %v43_v18 = vrot.slane %v42_v12, 2 }
   0x7   :  { %v18_v16 = vadd.f32 %v17_v10, %v15_v4  ;;  %v55_v19 = vrot.slane %v54_v13, 2  ;;  %v24_v20 = vadd.f32 %v23_v14, %v16_v8  ;;  %v61_v21 = vrot.slane %v60_v15, 2 }
   0x8   :  { %v38_v23 = vadd.f32 %v37_v17, %v36_v11  ;;  %v44_v24 = vadd.f32 %v43_v18, %v42_v12 }
   0x9   :  { %v19_v22 = vrot.slane %v18_v16, 2  ;;  %v56_v25 = vadd.f32 %v55_v19, %v54_v13  ;;  %v25_v26 = vrot.slane %v24_v20, 2  ;;  %v62_v27 = vadd.f32 %v61_v21, %v60_v15 }
   0xa   :  { %v39_v29 = vrot.slane %v38_v23, 1  ;;  %v45_v30 = vrot.slane %v44_v24, 1 }
   0xb   :  { %v20_v28 = vadd.f32 %v19_v22, %v18_v16  ;;  %v57_v31 = vrot.slane %v56_v25, 1  ;;  %v26_v32 = vadd.f32 %v25_v26, %v24_v20  ;;  %v63_v33 = vrot.slane %v62_v27, 1 }
   0xc   :  { %v40_v35 = vadd.f32 %v39_v29, %v38_v23  ;;  %v46_v36 = vadd.f32 %v45_v30, %v44_v24 }
   0xd   :  { %v21_v34 = vrot.slane %v20_v28, 1  ;;  %v58_v37 = vadd.f32 %v57_v31, %v56_v25  ;;  %v27_v38 = vrot.slane %v26_v32, 1  ;;  %v64_v39 = vadd.f32 %v63_v33, %v62_v27 }
   0xe   :  { %v49_v41 = vsel %vm31_vm0, %v46_v36, %v40_v35 }
   0xf   :  { %v22_v40 = vadd.f32 %v21_v34, %v20_v28  ;;  %v28_v42 = vadd.f32 %v27_v38, %v26_v32  ;;  %75 = vst [vmem:[%s115_s2 + $0x2] sm:$0x3] %v49_v41  ;;  %v67_v43 = vsel %vm31_vm0, %v64_v39, %v58_v37 }
  0x10   :  { %76 = vst [vmem:[%s115_s2 + $0x4] sm:$0x3] %v67_v43 }
  0x11   :  { %v32_v44 = vsel %vm31_vm0, %v28_v42, %v22_v40 }
  0x12   :  { %34 = vst [vmem:[%s115_s2] sm:$0x3] %v32_v44 }

</bundles_post_ra>
